<compile_context>
chip_gen: v5e
topology: v5e:2x2
jax: 0.10.0
libtpu: 0.0.40
codegen_flags: <defaults>
</compile_context>

<pallas_src>
import math

import jax
import jax.numpy as jnp
from jax.experimental import pallas as pl
from jax.experimental.pallas import tpu as pltpu

# ---- module hyper-parameters (consistent with the PyTorch __init__) ----
B = 16                  # batch (the squeezed leading dim of query/key/value)
EMBED_DIM = 32
NUM_HEADS = 4
LATENT_DIM = 16
HIDDEN_DIM = 32
NUM_MLP_LAYERS = 3
LAST_LAYER_OUT_DIM = 8
LAST_LAYER_ACT = True
IN_CAT_DIM = 0          # no inCat concatenation in this instantiation

# ---- kernel layout constants ----
LANE = 128              # TPU lane width; all packed tensors are 128 lanes wide
SUBLANE = 8
MAX_BATCH_TILE = 256    # cap on rows per grid step (keeps per-tile VMEM tiny)

# packed parameter buffer row offsets (all starts are multiples of 8)
R_W1 = 0                       # folded  wv @ wo @ w1 : (LATENT_DIM, LANE)
R_W2 = R_W1 + LATENT_DIM       # w2 embedded in (LANE, LANE), zero-padded
R_W3 = R_W2 + LANE             # w3 embedded in (LANE, LANE), zero-padded
R_B1 = R_W3 + LANE             # folded bias row
R_B2 = R_B1 + SUBLANE
R_B3 = R_B2 + SUBLANE
P_ROWS = R_B3 + SUBLANE        # 296 rows x 128 lanes x 4 B  ~= 148 KiB


def attn_cond_block_kernel(x_ref, p_ref, o_ref):
    """x:(TB, LATENT_DIM)  p:(P_ROWS, 128) packed params  o:(TB, 128) lane-dense."""
    f32 = jnp.float32
    x = x_ref[...]                                    # (TB, L)

    w1 = p_ref[R_W1:R_W1 + LATENT_DIM, :]             # (L, 128)   folded wv@wo@w1
    w2 = p_ref[R_W2:R_W2 + LANE, :]                   # (128, 128) rows/cols >= H are 0
    w3 = p_ref[R_W3:R_W3 + LANE, :]                   # (128, 128) cols >= OUT are 0
    b1 = p_ref[R_B1:R_B1 + 1, :]                      # (1, 128), zero-padded
    b2 = p_ref[R_B2:R_B2 + 1, :]
    b3 = p_ref[R_B3:R_B3 + 1, :]

    # MLP over the (degenerate) attention output; pad lanes stay exactly zero.
    h = jnp.maximum(jnp.dot(x, w1, preferred_element_type=f32) + b1, 0.0)
    h = jnp.maximum(jnp.dot(h, w2, preferred_element_type=f32) + b2, 0.0)
    h = jnp.maximum(jnp.dot(h, w3, preferred_element_type=f32) + b3, 0.0)
    o_ref[...] = h


# --------------------------- host-side parameter setup ---------------------------

def init_raw_params(key):
    """Deterministic synthetic parameters (nn.Linear-style init, pre-transposed to [in,out])."""
    ks = jax.random.split(key, 8)

    def lin(kk, in_dim, out_dim):
        bound = 1.0 / math.sqrt(in_dim)
        w = jax.random.uniform(kk, (in_dim, out_dim), jnp.float32, -bound, bound)
        b = jax.random.uniform(jax.random.fold_in(kk, 1), (1, out_dim),
                               jnp.float32, -bound, bound)
        return w, b

    wq, bq = lin(ks[5], EMBED_DIM, EMBED_DIM)     # q_proj_weight.T (cancels; kept for ref)
    wk, bk = lin(ks[6], LATENT_DIM, EMBED_DIM)    # k_proj_weight.T (cancels; kept for ref)
    wv, bv = lin(ks[0], LATENT_DIM, EMBED_DIM)    # v_proj_weight.T
    wo, bo = lin(ks[1], EMBED_DIM, EMBED_DIM)     # out_proj.weight.T
    w1, b1 = lin(ks[2], EMBED_DIM + IN_CAT_DIM, HIDDEN_DIM)
    w2, b2 = lin(ks[3], HIDDEN_DIM, HIDDEN_DIM)
    w3, b3 = lin(ks[4], HIDDEN_DIM, LAST_LAYER_OUT_DIM)
    return dict(wq=wq, bq=bq, wk=wk, bk=bk, wv=wv, bv=bv, wo=wo, bo=bo,
                w1=w1, b1=b1, w2=w2, b2=b2, w3=w3, b3=b3)


def pack_params(raw):
    """Fold v_proj->out_proj->Linear1 and pack everything into one (P_ROWS,128) buffer."""
    hp = jax.lax.Precision.HIGHEST
    wv_wo = jnp.dot(raw["wv"], raw["wo"], precision=hp)
    w_fold = jnp.dot(wv_wo, raw["w1"], precision=hp)                          # (L, H)
    b_fold = (jnp.dot(jnp.dot(raw["bv"], raw["wo"], precision=hp) + raw["bo"],
                      raw["w1"], precision=hp) + raw["b1"])                    # (1, H)

    p = jnp.zeros((P_ROWS, LANE), jnp.float32)
    p = p.at[R_W1:R_W1 + LATENT_DIM, :HIDDEN_DIM].set(w_fold)
    p = p.at[R_W2:R_W2 + HIDDEN_DIM, :HIDDEN_DIM].set(raw["w2"])
    p = p.at[R_W3:R_W3 + HIDDEN_DIM, :LAST_LAYER_OUT_DIM].set(raw["w3"])
    p = p.at[R_B1, :HIDDEN_DIM].set(b_fold[0])
    p = p.at[R_B2, :HIDDEN_DIM].set(raw["b2"][0])
    p = p.at[R_B3, :LAST_LAYER_OUT_DIM].set(raw["b3"][0])
    return p


# --------------------------------- wrapper ---------------------------------

def attn_cond_block(packed_params, query, key, value):
    # query/key are accepted for API fidelity but are mathematically irrelevant:
    # softmax over a single key is exactly 1, so the MHA output depends only on value.
    del query, key

    b = value.shape[0]
    b_pad = ((b + SUBLANE - 1) // SUBLANE) * SUBLANE
    tile = min(b_pad, MAX_BATCH_TILE)                 # one grid step for small batches
    b_pad = ((b_pad + tile - 1) // tile) * tile
    if b_pad != b:
        value = jnp.pad(value, ((0, b_pad - b), (0, 0)))

    out = pl.pallas_call(
        attn_cond_block_kernel,
        out_shape=jax.ShapeDtypeStruct((b_pad, LANE), jnp.float32),
        grid_spec=pltpu.PrefetchScalarGridSpec(
            num_scalar_prefetch=0,
            grid=(b_pad // tile,),
            in_specs=[
                pl.BlockSpec((tile, LATENT_DIM), lambda i: (i, 0)),   # per-tile batch
                pl.BlockSpec((P_ROWS, LANE), lambda i: (0, 0)),       # weights resident
            ],
            out_specs=pl.BlockSpec((tile, LANE), lambda i: (i, 0)),   # lane-dense slab
        ),
        compiler_params=pltpu.CompilerParams(
            dimension_semantics=("parallel",)),     # v7x: split batch tiles across both TCs
    )(value, packed_params)

    return out[:b, :LAST_LAYER_OUT_DIM]


# ------------------------------- pure-JAX reference -------------------------------

def reference(raw, query, key, value):
    """Full MHA math (q/k projections + softmax over the single key) + MLP."""
    hp = jax.lax.Precision.HIGHEST
    bsz = query.shape[0]
    hd = EMBED_DIM // NUM_HEADS

    q = jnp.dot(query, raw["wq"], precision=hp) + raw["bq"]          # (B, E)
    k = jnp.dot(key,   raw["wk"], precision=hp) + raw["bk"]          # (B, E)
    v = jnp.dot(value, raw["wv"], precision=hp) + raw["bv"]          # (B, E)

    qh = q.reshape(bsz, NUM_HEADS, 1, hd) / math.sqrt(hd)
    kh = k.reshape(bsz, NUM_HEADS, 1, hd)
    vh = v.reshape(bsz, NUM_HEADS, 1, hd)
    scores = jnp.einsum('bhqd,bhkd->bhqk', qh, kh, precision=hp)     # (B, H, 1, 1)
    attn = jax.nn.softmax(scores, axis=-1)                           # == 1 exactly
    ctx = jnp.einsum('bhqk,bhkd->bhqd', attn, vh, precision=hp)      # (B, H, 1, hd)
    ctx = ctx.reshape(bsz, EMBED_DIM)
    attn_out = jnp.dot(ctx, raw["wo"], precision=hp) + raw["bo"]     # out_proj

    h = jnp.maximum(jnp.dot(attn_out, raw["w1"], precision=hp) + raw["b1"], 0.0)
    h = jnp.maximum(jnp.dot(h, raw["w2"], precision=hp) + raw["b2"], 0.0)
    h = jnp.maximum(jnp.dot(h, raw["w3"], precision=hp) + raw["b3"], 0.0)
    return h


if __name__ == "__main__":
    root = jax.random.PRNGKey(0)
    k_param, k_q, k_k, k_v = jax.random.split(root, 4)

    raw = init_raw_params(k_param)
    packed = pack_params(raw)

    query = jax.random.normal(k_q, (B, EMBED_DIM), jnp.float32)
    key = jax.random.normal(k_k, (B, LATENT_DIM), jnp.float32)
    value = jax.random.normal(k_v, (B, LATENT_DIM), jnp.float32)

    out = attn_cond_block(packed, query, key, value)
    out = jax.block_until_ready(out)

    ref = reference(raw, query, key, value)
    assert out.shape == (B, LAST_LAYER_OUT_DIM)
    assert jnp.allclose(out, ref, rtol=2e-4, atol=2e-4), "mismatch vs reference"

    print("KERNEL_OK")
</pallas_src>

<mosaic_0001>
module attributes {stable_mosaic.version = 11 : i64} {
  func.func @attn_cond_block_kernel(%arg0: i32, %arg1: memref<16x16xf32, #tpu.memory_space<vmem>>, %arg2: memref<296x128xf32, #tpu.memory_space<vmem>>, %arg3: memref<16x128xf32, #tpu.memory_space<vmem>>) attributes {dimension_semantics = [#tpu.dimension_semantics<parallel>], iteration_bounds = array<i64: 1>, scalar_prefetch = 0 : i64, scratch_operands = 0 : i64, tpu.core_type = #tpu.core_type<tc>, window_params = [{transform_indices = @transform_0, window_bounds = array<i64: 16, 16>}, {pipeline_mode = #tpu.pipeline_mode<synchronous>, transform_indices = @transform_1, window_bounds = array<i64: 296, 128>}, {transform_indices = @transform_2, window_bounds = array<i64: 16, 128>}]} {
    %c0 = arith.constant 0 : index
    %c0_0 = arith.constant 0 : index
    %0 = vector.load %arg1[%c0, %c0_0] : memref<16x16xf32, #tpu.memory_space<vmem>>, vector<16x16xf32>
    %c0_1 = arith.constant 0 : index
    %c0_2 = arith.constant 0 : index
    %1 = vector.load %arg2[%c0_1, %c0_2] : memref<296x128xf32, #tpu.memory_space<vmem>>, vector<16x128xf32>
    %c16 = arith.constant 16 : index
    %c0_3 = arith.constant 0 : index
    %2 = vector.load %arg2[%c16, %c0_3] : memref<296x128xf32, #tpu.memory_space<vmem>>, vector<128x128xf32>
    %c144 = arith.constant 144 : index
    %c0_4 = arith.constant 0 : index
    %3 = vector.load %arg2[%c144, %c0_4] : memref<296x128xf32, #tpu.memory_space<vmem>>, vector<128x128xf32>
    %c272 = arith.constant 272 : index
    %c0_5 = arith.constant 0 : index
    %4 = vector.load %arg2[%c272, %c0_5] : memref<296x128xf32, #tpu.memory_space<vmem>>, vector<1x128xf32>
    %c280 = arith.constant 280 : index
    %c0_6 = arith.constant 0 : index
    %5 = vector.load %arg2[%c280, %c0_6] : memref<296x128xf32, #tpu.memory_space<vmem>>, vector<1x128xf32>
    %c288 = arith.constant 288 : index
    %c0_7 = arith.constant 0 : index
    %6 = vector.load %arg2[%c288, %c0_7] : memref<296x128xf32, #tpu.memory_space<vmem>>, vector<1x128xf32>
    %cst = arith.constant dense<0.000000e+00> : vector<16x128xf32>
    %7 = tpu.matmul %0, %1, %cst {dimension_numbers = #tpu.dot_dimension_numbers<[1], [0], [0], [1], [0, 0, 1, 1], [], []>} : vector<16x16xf32>, vector<16x128xf32>, vector<16x128xf32> -> vector<16x128xf32>
    %8 = vector.broadcast %4 : vector<1x128xf32> to vector<16x128xf32>
    %9 = arith.addf %7, %8 : vector<16x128xf32>
    %cst_8 = arith.constant 0.000000e+00 : f32
    %10 = vector.broadcast %cst_8 : f32 to vector<16x128xf32>
    %11 = arith.maximumf %9, %10 : vector<16x128xf32>
    %cst_9 = arith.constant dense<0.000000e+00> : vector<16x128xf32>
    %12 = tpu.matmul %11, %2, %cst_9 {dimension_numbers = #tpu.dot_dimension_numbers<[1], [0], [0], [1], [0, 0, 1, 1], [], []>} : vector<16x128xf32>, vector<128x128xf32>, vector<16x128xf32> -> vector<16x128xf32>
    %13 = vector.broadcast %5 : vector<1x128xf32> to vector<16x128xf32>
    %14 = arith.addf %12, %13 : vector<16x128xf32>
    %cst_10 = arith.constant 0.000000e+00 : f32
    %15 = vector.broadcast %cst_10 : f32 to vector<16x128xf32>
    %16 = arith.maximumf %14, %15 : vector<16x128xf32>
    %cst_11 = arith.constant dense<0.000000e+00> : vector<16x128xf32>
    %17 = tpu.matmul %16, %3, %cst_11 {dimension_numbers = #tpu.dot_dimension_numbers<[1], [0], [0], [1], [0, 0, 1, 1], [], []>} : vector<16x128xf32>, vector<128x128xf32>, vector<16x128xf32> -> vector<16x128xf32>
    %18 = vector.broadcast %6 : vector<1x128xf32> to vector<16x128xf32>
    %19 = arith.addf %17, %18 : vector<16x128xf32>
    %cst_12 = arith.constant 0.000000e+00 : f32
    %20 = vector.broadcast %cst_12 : f32 to vector<16x128xf32>
    %21 = arith.maximumf %19, %20 : vector<16x128xf32>
    %c0_13 = arith.constant 0 : index
    %c0_14 = arith.constant 0 : index
    %22 = vector.load %arg3[%c0_13, %c0_14] : memref<16x128xf32, #tpu.memory_space<vmem>>, vector<16x128xf32>
    tpu.vector_store %arg3[%c0_13, %c0_14], %21 {strides = array<i32>} : memref<16x128xf32, #tpu.memory_space<vmem>>, vector<16x128xf32>,
    return
  }
  func.func @transform_0(%arg0: i32) -> (i32, i32) {
    %c0_i32 = arith.constant 0 : i32
    %c0_i32_0 = arith.constant 0 : i32
    return %arg0, %c0_i32 : i32, i32
  }
  func.func @transform_1(%arg0: i32) -> (i32, i32) {
    %c0_i32 = arith.constant 0 : i32
    %c0_i32_0 = arith.constant 0 : i32
    %c0_i32_1 = arith.constant 0 : i32
    return %c0_i32, %c0_i32_0 : i32, i32
  }
  func.func @transform_2(%arg0: i32) -> (i32, i32) {
    %c0_i32 = arith.constant 0 : i32
    %c0_i32_0 = arith.constant 0 : i32
    return %arg0, %c0_i32 : i32, i32
  }
}

</mosaic_0001>

<bundles_post_ra>
// kernel: tpu_custom_call.1
= control target key start
LH: loop header
LB: loop body
LE: loop exit
PB: predicated region body
PF: predicated region fallthrough
CT: control target
= control target key end

     0   :  { %7 = vsyncpa [#allocation3], 0  ;;  %s350_s0 = inlined_call_operand.hbm [shape: f32[16,16], index: 0, kind: input, shape index: {}]   ;;  %s351_s1 = inlined_call_operand.hbm [shape: f32[296,128], index: 1, kind: input, shape index: {}]   ;;  %s352_s2 = inlined_call_operand.hbm [shape: f32[16,128], index: 2, kind: output, shape index: {}]  }
   0x1   :  { %8 = vsyncpa [#allocation6], 0 }
   0x2   :  { %9 = vsyncpa [#allocation4], 0  ;;  %s14_s11 = sshll.u32 %s350_s0, 4  ;;  %s310_s12 = smov [#allocation2]   ;;  %s15_s11 = int_to_ptr.hbm [resolvable:$true] %s14_s11 }
   0x3   :  { %s16_s13 = sshll.u32 %s310_s12, 4  ;;  %s27_s16 = sshll.u32 %s351_s1, 4  ;;  %s17_s13 = int_to_ptr.vmem [resolvable:$true] %s16_s13  ;;  %s28_s16 = int_to_ptr.hbm [resolvable:$true] %s27_s16 }
   0x4   :  { %s311_s17 = smov 128   ;;  %s312_s18 = smov 8  }
   0x5   :  { %22 = dma.hbm_to_vmem [thread:$0]  %s15_s11, 256, %s17_s13, [#allocation3], %s311_s17, %s311_s17, %s312_s18  }
   0x6   :  { %s313_s19 = smov [#allocation5]  }
   0x7   :  { %s29_s20 = sshll.u32 %s313_s19, 4  ;;  %s30_s20 = int_to_ptr.vmem [resolvable:$true] %s29_s20 }
   0x8   :  { %35 = dma.hbm_to_vmem [thread:$0]  %s28_s16, 4736, %s30_s20, [#allocation6], %s311_s17, %s311_s17, %s312_s18  }
   0x9   :  { %304 = dma.done.wait [#allocation3], 256  }
   0xa   :  { %305 = vsyncadd [#allocation3], 4294967040 }
   0xb   :  { %306 = dma.done.wait [#allocation6], 4736  }
   0xc   :  { %307 = vsyncadd [#allocation6], 4294962560  ;;  %v47_v0 = vld [vmem:[#allocation5 + $0x8] sm:$0xff]  ;;  %v46_v1 = vld [vmem:[#allocation5] sm:$0xff]  ;;  %vm84_vm0 = vcmask 130048   ;;  %s314_s0 = smov [#allocation7]  }
   0xd   :  { %105 = vmatpush.msra.mxu0 %v47_v0  ;;  %v44_v2 = vld [vmem:[#allocation2] sm:$0xff]  ;;  %v63_v3 = vld [vmem:[#allocation5 + $0x88] sm:$0xff]  ;;  %v62_v4 = vld [vmem:[#allocation5 + $0x80] sm:$0xff]  ;;  %s174_s1 = sshll.u32 %s314_s0, 4  ;;  %s176_s23 = sshll.u32 %s352_s2, 4  ;;  %s175_s1 = int_to_ptr.vmem [resolvable:$true] %s174_s1  ;;  %s177_s23 = int_to_ptr.hbm [resolvable:$true] %s176_s23 }
   0xe   :  { %117 = vmatpush.msra.mxu1 %v63_v3  ;;  %192 = vmatpush.msra.mxu3 %v63_v3  ;;  %v61_v5 = vld [vmem:[#allocation5 + $0x78] sm:$0xff]  ;;  %v60_v6 = vld [vmem:[#allocation5 + $0x70] sm:$0xff]  ;;  %v59_v7 = vld [vmem:[#allocation5 + $0x68] sm:$0xff] }
   0xf   :  { %106 = vmatpush.msra.mxu0 %v46_v1  ;;  %v45_v8 = vld [vmem:[#allocation2 + $0x8] sm:$0xff]  ;;  %v58_v9 = vld [vmem:[#allocation5 + $0x60] sm:$0xff]  ;;  %v56_v11 = vld [vmem:[#allocation5 + $0x50] sm:$0xff] }
  0x10   :  { %190 = vmatmul.msk.f32.vlgmr.msra.gmra.mxu0 %vm84_vm0, %v44_v2  ;;  %118 = vmatpush.msra.mxu1 %v62_v4  ;;  %v57_v10 = vld [vmem:[#allocation5 + $0x58] sm:$0xff]  ;;  %v55_v12 = vld [vmem:[#allocation5 + $0x48] sm:$0xff]  ;;  %v54_v13 = vld [vmem:[#allocation5 + $0x40] sm:$0xff] }
  0x11   :  { %193 = vmatpush.msra.mxu3 %v62_v4  ;;  %v53_v14 = vld [vmem:[#allocation5 + $0x38] sm:$0xff]  ;;  %v52_v15 = vld [vmem:[#allocation5 + $0x30] sm:$0xff]  ;;  %v51_v16 = vld [vmem:[#allocation5 + $0x28] sm:$0xff] }
  0x12   :  { %119 = vmatpush.msra.mxu1 %v61_v5  ;;  %v50_v17 = vld [vmem:[#allocation5 + $0x20] sm:$0xff]  ;;  %v49_v18 = vld [vmem:[#allocation5 + $0x18] sm:$0xff]  ;;  %v48_v19 = vld [vmem:[#allocation5 + $0x10] sm:$0xff] }
  0x13   :  { %194 = vmatpush.msra.mxu3 %v61_v5  ;;  %v79_v20 = vld [vmem:[#allocation5 + $0x108] sm:$0xff]  ;;  %v78_v21 = vld [vmem:[#allocation5 + $0x100] sm:$0xff]  ;;  %v77_v22 = vld [vmem:[#allocation5 + $0xf8] sm:$0xff] }
  0x14   :  { %120 = vmatpush.msra.mxu1 %v60_v6  ;;  %143 = vmatpush.msrb.mxu0 %v79_v20  ;;  %v76_v23 = vld [vmem:[#allocation5 + $0xf0] sm:$0xff]  ;;  %v75_v24 = vld [vmem:[#allocation5 + $0xe8] sm:$0xff]  ;;  %v74_v25 = vld [vmem:[#allocation5 + $0xe0] sm:$0xff] }
  0x15   :  { %195 = vmatpush.msra.mxu3 %v60_v6  ;;  %208 = vmatpush.msra.mxu2 %v79_v20  ;;  %v73_v26 = vld [vmem:[#allocation5 + $0xd8] sm:$0xff]  ;;  %v72_v27 = vld [vmem:[#allocation5 + $0xd0] sm:$0xff]  ;;  %v71_v28 = vld [vmem:[#allocation5 + $0xc8] sm:$0xff] }
  0x16   :  { %121 = vmatpush.msra.mxu1 %v59_v7  ;;  %144 = vmatpush.msrb.mxu0 %v78_v21  ;;  %v229_v29 = vld [vmem:[#allocation5 + $0x110] ss:$0 sm:$0xff]  ;;  %v70_v30 = vld [vmem:[#allocation5 + $0xc0] sm:$0xff]  ;;  %v69_v31 = vld [vmem:[#allocation5 + $0xb8] sm:$0xff] }
  0x17   :  { %196 = vmatpush.msra.mxu3 %v59_v7  ;;  %209 = vmatpush.msra.mxu2 %v78_v21  ;;  %v68_v34 = vld [vmem:[#allocation5 + $0xb0] sm:$0xff]  ;;  %v67_v36 = vld [vmem:[#allocation5 + $0xa8] sm:$0xff]  ;;  %v66_v40 = vld [vmem:[#allocation5 + $0xa0] sm:$0xff] }
  0x18   :  { %191 = vmatmul.msk.f32.gmra.mxu0 %vm84_vm0, %v45_v8  ;;  %122 = vmatpush.msra.mxu1 %v58_v9  ;;  %v65_v41 = vld [vmem:[#allocation5 + $0x98] sm:$0xff]  ;;  %v64_v42 = vld [vmem:[#allocation5 + $0x90] sm:$0xff]  ;;  %v231_v50 = vld [vmem:[#allocation5 + $0x120] ss:$0 sm:$0xff] }
  0x19   :  { %197 = vmatpush.msra.mxu3 %v58_v9  ;;  %145 = vmatpush.msrb.mxu0 %v77_v22  ;;  %v230_v43 = vld [vmem:[#allocation5 + $0x118] ss:$0 sm:$0xff] }
  0x1a   :  { %123 = vmatpush.msra.mxu1 %v57_v10  ;;  %210 = vmatpush.msra.mxu2 %v77_v22 }
  0x1b   :  { %198 = vmatpush.msra.mxu3 %v57_v10  ;;  %146 = vmatpush.msrb.mxu0 %v76_v23 }
  0x1c   :  { %124 = vmatpush.msra.mxu1 %v56_v11  ;;  %211 = vmatpush.msra.mxu2 %v76_v23 }
  0x1d   :  { %199 = vmatpush.msra.mxu3 %v56_v11  ;;  %147 = vmatpush.msrb.mxu0 %v75_v24 }
  0x1e   :  { %125 = vmatpush.msra.mxu1 %v55_v12  ;;  %212 = vmatpush.msra.mxu2 %v75_v24 }
  0x1f   :  { %200 = vmatpush.msra.mxu3 %v55_v12  ;;  %148 = vmatpush.msrb.mxu0 %v74_v25 }
  0x20   :  { %126 = vmatpush.msra.mxu1 %v54_v13  ;;  %213 = vmatpush.msra.mxu2 %v74_v25 }
  0x21   :  { %201 = vmatpush.msra.mxu3 %v54_v13  ;;  %149 = vmatpush.msrb.mxu0 %v73_v26 }
  0x22   :  { %127 = vmatpush.msra.mxu1 %v53_v14  ;;  %214 = vmatpush.msra.mxu2 %v73_v26 }
  0x23   :  { %202 = vmatpush.msra.mxu3 %v53_v14  ;;  %150 = vmatpush.msrb.mxu0 %v72_v27 }
  0x24   :  { %128 = vmatpush.msra.mxu1 %v52_v15  ;;  %215 = vmatpush.msra.mxu2 %v72_v27 }
  0x25   :  { %203 = vmatpush.msra.mxu3 %v52_v15  ;;  %151 = vmatpush.msrb.mxu0 %v71_v28 }
  0x26   :  { %129 = vmatpush.msra.mxu1 %v51_v16  ;;  %216 = vmatpush.msra.mxu2 %v71_v28 }
  0x27   :  { %204 = vmatpush.msra.mxu3 %v51_v16  ;;  %152 = vmatpush.msrb.mxu0 %v70_v30 }
  0x28   :  { %130 = vmatpush.msra.mxu1 %v50_v17  ;;  %217 = vmatpush.msra.mxu2 %v70_v30 }
  0x29   :  { %205 = vmatpush.msra.mxu3 %v50_v17  ;;  %153 = vmatpush.msrb.mxu0 %v69_v31 }
  0x2a   :  { %131 = vmatpush.msra.mxu1 %v49_v18  ;;  %218 = vmatpush.msra.mxu2 %v69_v31 }
  0x2b   :  { %206 = vmatpush.msra.mxu3 %v49_v18  ;;  %154 = vmatpush.msrb.mxu0 %v68_v34 }
  0x2c   :  { %132 = vmatpush.msra.mxu1 %v48_v19  ;;  %219 = vmatpush.msra.mxu2 %v68_v34 }
  0x2d   :  { %207 = vmatpush.msra.mxu3 %v48_v19  ;;  %155 = vmatpush.msrb.mxu0 %v67_v36 }
  0x2e   :  { %220 = vmatpush.msra.mxu2 %v67_v36 }
  0x2f   :  { %156 = vmatpush.msrb.mxu0 %v66_v40 }
  0x30   :  { %221 = vmatpush.msra.mxu2 %v66_v40 }
  0x31   :  { %157 = vmatpush.msrb.mxu0 %v65_v41 }
  0x32   :  { %222 = vmatpush.msra.mxu2 %v65_v41 }
  0x33   :  { %158 = vmatpush.msrb.mxu0 %v64_v42 }
  0x34   :  { %223 = vmatpush.msra.mxu2 %v64_v42 }
  0x8d   :  { %v108_v32 = vpop.f32.mrf.mxu0 }
  0x8e   :  { %v109_v33 = vadd.f32 %v229_v29, %v108_v32 }
  0x90   :  { %v114_v35 = vmax.f32 %v109_v33, 0.0 }
  0x92   :  { %133 = vmatmul.f32.vlgmr.msra.gmra.mxu1 %v114_v35 }
  0x95   :  { %v111_v37 = vpop.f32.mrf.mxu0 }
  0x96   :  { %v112_v38 = vadd.f32 %v229_v29, %v111_v37 }
  0x98   :  { %v115_v39 = vmax.f32 %v112_v38, 0.0 }
  0x9a   :  { %136 = vmatmul.f32.vlgmr.msra.gmra.mxu3 %v115_v39 }
 0x10f   :  { %v134_v44 = vpop.f32.mrf.mxu1 }
 0x110   :  { %v135_v45 = vadd.f32 %v230_v43, %v134_v44 }
 0x112   :  { %v140_v46 = vmax.f32 %v135_v45, 0.0 }
 0x114   :  { %159 = vmatmul.f32.vlgmr.msrb.gmra.mxu0 %v140_v46 }
 0x11d   :  { %v137_v47 = vpop.f32.mrf.mxu3 }
 0x11e   :  { %v138_v48 = vadd.f32 %v230_v43, %v137_v47 }
 0x120   :  { %v141_v49 = vmax.f32 %v138_v48, 0.0 }
 0x122   :  { %162 = vmatmul.f32.vlgmr.msra.gmra.mxu2 %v141_v49 }
 0x191   :  { %v160_v51 = vpop.f32.mrf.mxu0 }
 0x192   :  { %v161_v52 = vadd.f32 %v231_v50, %v160_v51 }
 0x194   :  { %v166_v53 = vmax.f32 %v161_v52, 0.0 }
 0x196   :  { %168 = vst [vmem:[#allocation7] sm:$0xff] %v166_v53 }
 0x1a5   :  { %v163_v54 = vpop.f32.mrf.mxu2 }
 0x1a6   :  { %v164_v55 = vadd.f32 %v231_v50, %v163_v54 }
 0x1a8   :  { %v167_v56 = vmax.f32 %v164_v55, 0.0 }
 0x1aa   :  { %169 = vst [vmem:[#allocation7 + $0x8] sm:$0xff] %v167_v56 }
 0x1ab   :  { %182 = dma.vmem_to_hbm [thread:$0]  %s175_s1, 256, %s177_s23, [#allocation4], %s311_s17, %s311_s17, %s312_s18  }
 0x1ac   :  { %308 = dma.done.wait [#allocation4], 256  }
 0x1ad   :  { %309 = vsyncadd [#allocation4], 4294967040 }
 0x1ae   :  { %187 = vsyncpa [#allocation3], 1 }
 0x1af   :  { %188 = vsyncpa [#allocation6], 1 }
 0x1b0   :  { %189 = vsyncpa [#allocation4], 1 }

</bundles_post_ra>
